<compile_context>
chip_gen: v6e
topology: v6e:2x2x1
jax: 0.10.0
libtpu: 0.0.40
codegen_flags: <defaults>
</compile_context>

<pallas_src>
import functools

import jax
import jax.numpy as jnp
from jax import lax
from jax.experimental import pallas as pl
from jax.experimental.pallas import tpu as pltpu


# -----------------------------------------------------------------------------
# Tiling helpers
# -----------------------------------------------------------------------------
def _largest_tile(n_pad: int, cap: int) -> int:
    """Largest multiple of 128 that divides n_pad and is <= cap (n_pad must be
    a multiple of 128)."""
    t = min(cap, n_pad)
    t -= t % 128
    while n_pad % t != 0:
        t -= 128
    return t


def _choose_padding(n: int, cap: int = 512, max_waste: float = 0.08):
    """Pad n up to a multiple of 128.  Among candidate paddings within
    ~max_waste extra elements, pick the one that gives the largest tile
    (multiple of 128, <= cap, dividing the padded length).
    Returns (n_pad, tile)."""
    base = -(-n // 128) * 128
    budget = max(base, int(n * (1.0 + max_waste)) // 128 * 128)
    best_pad, best_tile = base, _largest_tile(base, cap)
    for tile in range(128, cap + 1, 128):
        n_pad = -(-n // tile) * tile
        if n_pad <= budget:
            t_eff = _largest_tile(n_pad, cap)
            if t_eff > best_tile or (t_eff == best_tile and n_pad < best_pad):
                best_pad, best_tile = n_pad, t_eff
    return best_pad, best_tile


def _has_bf16_eup() -> bool:
    """bf16 transcendentals pay off on v6e / v7x; v5e and older have no bf16
    EUP/VPU, so keep the exp in f32 there (and on anything unrecognized)."""
    try:
        kind = jax.devices()[0].device_kind.lower()
    except Exception:
        return False
    return not any(tag in kind for tag in ("v2", "v3", "v4", "v5"))


# -----------------------------------------------------------------------------
# Kernel 1: fused QKV projection (three 1x1 convs == one channel matmul).
# -----------------------------------------------------------------------------
def _qkv_proj_kernel(x_ref, w_ref, b_ref, o_ref):
    # x: (C, tn) bf16 | w: (3C, C) bf16 | b: (3C, 1) f32 | o: (3C, tn) bf16
    acc = jnp.dot(w_ref[...], x_ref[...], preferred_element_type=jnp.float32)
    o_ref[...] = (acc + b_ref[...]).astype(o_ref.dtype)


# -----------------------------------------------------------------------------
# Kernel 2: flash attention with fused content-content + content-position
# scores, online softmax and key-padding masking.
# -----------------------------------------------------------------------------
def _flash_attn_kernel(q_ref, pos_ref, qk_ref, k_ref, v_ref, o_ref,
                       m_sc, l_sc, acc_sc,
                       *, n_valid, tk, mask_needed, bf16_exp):
    ki = pl.program_id(3)

    @pl.when(ki == 0)
    def _init():
        m_sc[...] = jnp.full(m_sc.shape, -jnp.inf, m_sc.dtype)
        l_sc[...] = jnp.zeros(l_sc.shape, l_sc.dtype)
        acc_sc[...] = jnp.zeros(acc_sc.shape, acc_sc.dtype)

    # Transposed score tile (no q.T / pos.T / attn.T anywhere):
    #   s_t[j, i] = energy[i, j]
    #             = sum_c k[c, j]  q[c, i]      (content_content)
    #             + sum_c q[c, j] pos[c, i]     (content_position)
    dims = (((0,), (0,)), ((), ()))
    s_t = lax.dot_general(k_ref[...], q_ref[...], dims,
                          preferred_element_type=jnp.float32)        # (tk, tq)
    s_t += lax.dot_general(qk_ref[...], pos_ref[...], dims,
                           preferred_element_type=jnp.float32)       # (tk, tq)

    if mask_needed:
        # Mask padded key columns (only the last ki block has any).
        key_idx = ki * tk + lax.broadcasted_iota(jnp.int32, s_t.shape, 0)
        s_t = jnp.where(key_idx < n_valid, s_t, jnp.float32(-1e30))

    m_prev = m_sc[...]                                               # (1, tq)
    m_new = jnp.maximum(m_prev, jnp.max(s_t, axis=0, keepdims=True))
    alpha = jnp.exp(m_prev - m_new)                                  # (1, tq) f32
    if bf16_exp:
        # v6e/v7x: EUP bf16 has ~2x throughput and p_t feeds a bf16 PV matmul
        # anyway; running sum / alpha stay f32.
        p_t = jnp.exp((s_t - m_new).astype(jnp.bfloat16))            # (tk, tq) bf16
    else:
        p_t = jnp.exp(s_t - m_new).astype(jnp.bfloat16)
    l_sc[...] = alpha * l_sc[...] + jnp.sum(p_t.astype(jnp.float32),
                                            axis=0, keepdims=True)
    # out[c, i] += sum_j v[c, j] * p_t[j, i]  -> plain MXU matmul, no transpose.
    acc_sc[...] = alpha * acc_sc[...] + jnp.dot(
        v_ref[...], p_t, preferred_element_type=jnp.float32)         # (d, tq)
    m_sc[...] = m_new

    @pl.when(ki == pl.num_programs(3) - 1)
    def _finalize():
        o_ref[...] = (acc_sc[...] *
                      pl.reciprocal(l_sc[...], approx=True)).astype(o_ref.dtype)


# -----------------------------------------------------------------------------
# Wrapper
# -----------------------------------------------------------------------------
def tra_attention(x, params, heads):
    B, C, W, H = x.shape
    N = W * H
    d = C // heads

    # ---- padded length & tiles ------------------------------------------------
    n_pad, tile = _choose_padding(N, cap=512)
    pad = n_pad - N
    tq = tk = tile                       # large query tile; kv reduction is last
    tn = _largest_tile(n_pad, 512)       # kernel-1 lane tile (<=512: v5e-safe)
    bf16_exp = _has_bf16_eup()

    # ---- parameter / input setup (plain-JAX glue, zero-padded along N) --------
    x_flat = x.reshape(B, C, N).astype(jnp.bfloat16)
    pos = (params["rel_h"] + params["rel_w"]).reshape(heads, d, N)
    pos = pos.astype(jnp.bfloat16)
    if pad:
        x_flat = jnp.pad(x_flat, ((0, 0), (0, 0), (0, pad)))
        pos = jnp.pad(pos, ((0, 0), (0, 0), (0, pad)))

    w_all = jnp.concatenate(
        [params["wq"], params["wk"], params["wv"]], axis=0).astype(jnp.bfloat16)
    b_all = jnp.concatenate(
        [params["bq"], params["bk"], params["bv"]], axis=0
    ).reshape(3 * C, 1).astype(jnp.float32)

    # ---- kernel 1: fused QKV projection ----------------------------------------
    qkv = pl.pallas_call(
        _qkv_proj_kernel,
        out_shape=jax.ShapeDtypeStruct((B, 3 * C, n_pad), jnp.bfloat16),
        grid_spec=pltpu.PrefetchScalarGridSpec(
            num_scalar_prefetch=0,
            grid=(B, n_pad // tn),
            in_specs=[
                pl.BlockSpec((None, C, tn), lambda b, t: (b, 0, t)),   # x
                pl.BlockSpec((3 * C, C), lambda b, t: (0, 0)),         # W_qkv
                pl.BlockSpec((3 * C, 1), lambda b, t: (0, 0)),         # b_qkv
            ],
            out_specs=pl.BlockSpec((None, 3 * C, tn), lambda b, t: (b, 0, t)),
        ),
        compiler_params=pltpu.CompilerParams(
            dimension_semantics=("parallel", "parallel")),
    )(x_flat, w_all, b_all)

    # Free reshape to (B, qkv, heads, d, N_pad); kernel 2 slices q/k/v views
    # straight out of this buffer via BlockSpecs — no broadcast / concat copies.
    qkv5 = qkv.reshape(B, 3, heads, d, n_pad)

    # ---- kernel 2: flash attention ----------------------------------------------
    grid = (B, heads, n_pad // tq, n_pad // tk)
    kernel = functools.partial(
        _flash_attn_kernel, n_valid=N, tk=tk, mask_needed=(pad > 0),
        bf16_exp=bf16_exp)

    out = pl.pallas_call(
        kernel,
        out_shape=jax.ShapeDtypeStruct((B, heads, d, n_pad), jnp.float32),
        grid_spec=pltpu.PrefetchScalarGridSpec(
            num_scalar_prefetch=0,
            grid=grid,
            in_specs=[
                # q, query side (qi tile)
                pl.BlockSpec((None, None, None, d, tq),
                             lambda b, h, qi, ki: (b, 0, h, 0, qi)),
                # pos, query side; un-broadcast — index_map ignores b
                pl.BlockSpec((None, d, tq),
                             lambda b, h, qi, ki: (h, 0, qi)),
                # q, key side (ki tile) for content_position
                pl.BlockSpec((None, None, None, d, tk),
                             lambda b, h, qi, ki: (b, 0, h, 0, ki)),
                # k, key side
                pl.BlockSpec((None, None, None, d, tk),
                             lambda b, h, qi, ki: (b, 1, h, 0, ki)),
                # v, key side
                pl.BlockSpec((None, None, None, d, tk),
                             lambda b, h, qi, ki: (b, 2, h, 0, ki)),
            ],
            out_specs=pl.BlockSpec((None, None, d, tq),
                                   lambda b, h, qi, ki: (b, h, 0, qi)),
            scratch_shapes=[
                pltpu.VMEM((1, tq), jnp.float32),   # running max
                pltpu.VMEM((1, tq), jnp.float32),   # running sum
                pltpu.VMEM((d, tq), jnp.float32),   # output accumulator
            ],
        ),
        compiler_params=pltpu.CompilerParams(
            dimension_semantics=("parallel", "parallel", "parallel",
                                 "arbitrary")),
    )(qkv5, pos, qkv5, qkv5, qkv5)

    # Drop padded queries; (B, heads, d, N) -> (B, C, W, H), same contiguity as
    # torch .view.
    if pad:
        out = out[..., :N]
    return out.reshape(B, C, W, H)


# -----------------------------------------------------------------------------
# Pure-JAX f32 reference mirroring the PyTorch forward exactly.
# -----------------------------------------------------------------------------
def tra_attention_ref(x, params, heads):
    B, C, W, H = x.shape
    N = W * H
    d = C // heads
    xf = x.reshape(B, C, N)

    def conv1x1(w, b):
        return jnp.einsum('oi,bin->bon', w, xf) + b[None, :, None]

    q = conv1x1(params["wq"], params["bq"]).reshape(B, heads, d, N)
    k = conv1x1(params["wk"], params["bk"]).reshape(B, heads, d, N)
    v = conv1x1(params["wv"], params["bv"]).reshape(B, heads, d, N)

    cc = jnp.einsum('bhdi,bhdj->bhij', q, k)
    pos = (params["rel_h"] + params["rel_w"]).reshape(heads, d, N)
    cp = jnp.einsum('hdi,bhdj->bhij', pos, q)
    energy = cc + cp
    attn = jax.nn.softmax(energy, axis=-1)
    out = jnp.einsum('bhdj,bhij->bhdi', v, attn)
    return out.reshape(B, C, W, H)


if __name__ == "__main__":
    # Small shapes consistent with the module: heads=4, C divisible by heads,
    # rel_h/rel_w sized to the input spatial dims.  N = 64 exercises the
    # padded/masked path (padded to 128).
    B, C, W, H = 2, 8, 8, 8
    heads = 4
    d = C // heads

    key = jax.random.PRNGKey(0)
    ks = jax.random.split(key, 9)
    scale = 0.1
    params = {
        "wq": scale * jax.random.normal(ks[0], (C, C), jnp.float32),
        "bq": scale * jax.random.normal(ks[1], (C,), jnp.float32),
        "wk": scale * jax.random.normal(ks[2], (C, C), jnp.float32),
        "bk": scale * jax.random.normal(ks[3], (C,), jnp.float32),
        "wv": scale * jax.random.normal(ks[4], (C, C), jnp.float32),
        "bv": scale * jax.random.normal(ks[5], (C,), jnp.float32),
        "rel_h": jax.random.normal(ks[6], (1, heads, d, 1, H), jnp.float32),
        "rel_w": jax.random.normal(ks[7], (1, heads, d, W, 1), jnp.float32),
    }
    x = jax.random.normal(ks[8], (B, C, W, H), jnp.float32)

    fwd = jax.jit(tra_attention, static_argnums=(2,))
    out = jax.block_until_ready(fwd(x, params, heads))

    ref = tra_attention_ref(x, params, heads)
    assert out.shape == (B, C, W, H)
    max_err = float(jnp.max(jnp.abs(out - ref)))
    # bf16 MXU operands + (possibly) bf16 exp + approx reciprocal => relaxed
    # tolerance vs the f32 reference.
    assert jnp.allclose(out, ref, atol=3e-2, rtol=3e-2), (
        f"mismatch vs reference (max abs err {max_err})")

    print("KERNEL_OK")
</pallas_src>

<mosaic_0001>
module attributes {stable_mosaic.version = 11 : i64} {
  func.func @_qkv_proj_kernel(%arg0: i32, %arg1: i32, %arg2: memref<1x8x128xbf16, #tpu.memory_space<vmem>>, %arg3: memref<24x8xbf16, #tpu.memory_space<vmem>>, %arg4: memref<24x1xf32, #tpu.memory_space<vmem>>, %arg5: memref<1x24x128xbf16, #tpu.memory_space<vmem>>) attributes {dimension_semantics = [#tpu.dimension_semantics<parallel>, #tpu.dimension_semantics<parallel>], iteration_bounds = array<i64: 2, 1>, scalar_prefetch = 0 : i64, scratch_operands = 0 : i64, tpu.core_type = #tpu.core_type<tc>, window_params = [{transform_indices = @transform_0, window_bounds = array<i64: 1, 8, 128>}, {pipeline_mode = #tpu.pipeline_mode<synchronous>, transform_indices = @transform_1, window_bounds = array<i64: 24, 8>}, {pipeline_mode = #tpu.pipeline_mode<synchronous>, transform_indices = @transform_2, window_bounds = array<i64: 24, 1>}, {transform_indices = @transform_3, window_bounds = array<i64: 1, 24, 128>}]} {
    %c0 = arith.constant 0 : index
    %c0_0 = arith.constant 0 : index
    %0 = vector.load %arg3[%c0, %c0_0] : memref<24x8xbf16, #tpu.memory_space<vmem>>, vector<24x8xbf16>
    %c0_1 = arith.constant 0 : index
    %c0_2 = arith.constant 0 : index
    %c0_3 = arith.constant 0 : index
    %1 = vector.load %arg2[%c0_1, %c0_2, %c0_3] : memref<1x8x128xbf16, #tpu.memory_space<vmem>>, vector<1x8x128xbf16>
    %2 = vector.shape_cast %1 : vector<1x8x128xbf16> to vector<8x128xbf16>
    %cst = arith.constant dense<0.000000e+00> : vector<24x128xf32>
    %3 = tpu.matmul %0, %2, %cst {dimension_numbers = #tpu.dot_dimension_numbers<[1], [0], [0], [1], [0, 0, 1, 1], [], []>} : vector<24x8xbf16>, vector<8x128xbf16>, vector<24x128xf32> -> vector<24x128xf32>
    %c0_4 = arith.constant 0 : index
    %c0_5 = arith.constant 0 : index
    %4 = vector.load %arg4[%c0_4, %c0_5] : memref<24x1xf32, #tpu.memory_space<vmem>>, vector<24x1xf32>
    %5 = vector.broadcast %4 : vector<24x1xf32> to vector<24x128xf32>
    %6 = arith.addf %3, %5 : vector<24x128xf32>
    %7 = arith.truncf %6 : vector<24x128xf32> to vector<24x128xbf16>
    %c0_6 = arith.constant 0 : index
    %c0_7 = arith.constant 0 : index
    %c0_8 = arith.constant 0 : index
    %8 = vector.load %arg5[%c0_6, %c0_7, %c0_8] : memref<1x24x128xbf16, #tpu.memory_space<vmem>>, vector<1x24x128xbf16>
    %9 = vector.shape_cast %8 : vector<1x24x128xbf16> to vector<24x128xbf16>
    %10 = vector.shape_cast %7 : vector<24x128xbf16> to vector<1x24x128xbf16>
    tpu.vector_store %arg5[%c0_6, %c0_7, %c0_8], %10 {strides = array<i32>} : memref<1x24x128xbf16, #tpu.memory_space<vmem>>, vector<1x24x128xbf16>,
    return
  }
  func.func @transform_0(%arg0: i32, %arg1: i32) -> (i32, i32, i32) {
    %c0_i32 = arith.constant 0 : i32
    %c0_i32_0 = arith.constant 0 : i32
    return %arg0, %c0_i32, %arg1 : i32, i32, i32
  }
  func.func @transform_1(%arg0: i32, %arg1: i32) -> (i32, i32) {
    %c0_i32 = arith.constant 0 : i32
    %c0_i32_0 = arith.constant 0 : i32
    %c0_i32_1 = arith.constant 0 : i32
    return %c0_i32, %c0_i32_0 : i32, i32
  }
  func.func @transform_2(%arg0: i32, %arg1: i32) -> (i32, i32) {
    %c0_i32 = arith.constant 0 : i32
    %c0_i32_0 = arith.constant 0 : i32
    %c0_i32_1 = arith.constant 0 : i32
    return %c0_i32, %c0_i32_0 : i32, i32
  }
  func.func @transform_3(%arg0: i32, %arg1: i32) -> (i32, i32, i32) {
    %c0_i32 = arith.constant 0 : i32
    %c0_i32_0 = arith.constant 0 : i32
    return %arg0, %c0_i32, %arg1 : i32, i32, i32
  }
}

module attributes {stable_mosaic.version = 11 : i64} {
  func.func @_flash_attn_kernel(%arg0: i32, %arg1: i32, %arg2: i32, %arg3: i32, %arg4: memref<1x1x1x2x128xbf16, #tpu.memory_space<vmem>>, %arg5: memref<1x2x128xbf16, #tpu.memory_space<vmem>>, %arg6: memref<1x1x1x2x128xbf16, #tpu.memory_space<vmem>>, %arg7: memref<1x1x1x2x128xbf16, #tpu.memory_space<vmem>>, %arg8: memref<1x1x1x2x128xbf16, #tpu.memory_space<vmem>>, %arg9: memref<1x1x2x128xf32, #tpu.memory_space<vmem>>, %arg10: memref<1x128xf32, #tpu.memory_space<vmem>>, %arg11: memref<1x128xf32, #tpu.memory_space<vmem>>, %arg12: memref<2x128xf32, #tpu.memory_space<vmem>>) attributes {dimension_semantics = [#tpu.dimension_semantics<parallel>, #tpu.dimension_semantics<parallel>, #tpu.dimension_semantics<parallel>, #tpu.dimension_semantics<arbitrary>], iteration_bounds = array<i64: 2, 4, 1, 1>, scalar_prefetch = 0 : i64, scratch_operands = 3 : i64, tpu.core_type = #tpu.core_type<tc>, window_params = [{transform_indices = @transform_0, window_bounds = array<i64: 1, 1, 1, 2, 128>}, {transform_indices = @transform_1, window_bounds = array<i64: 1, 2, 128>}, {transform_indices = @transform_2, window_bounds = array<i64: 1, 1, 1, 2, 128>}, {transform_indices = @transform_3, window_bounds = array<i64: 1, 1, 1, 2, 128>}, {transform_indices = @transform_4, window_bounds = array<i64: 1, 1, 1, 2, 128>}, {transform_indices = @transform_5, window_bounds = array<i64: 1, 1, 2, 128>}]} {
    %c0_i32 = arith.constant 0 : i32
    %0 = arith.cmpi eq, %arg3, %c0_i32 : i32
    %1 = arith.extui %0 : i1 to i32
    %c0_i32_0 = arith.constant 0 : i32
    %2 = arith.cmpi ne, %1, %c0_i32_0 : i32
    scf.if %2 {
      %cst_42 = arith.constant 0xFF800000 : f32
      %51 = vector.broadcast %cst_42 : f32 to vector<1x128xf32>
      %c0_43 = arith.constant 0 : index
      %c0_44 = arith.constant 0 : index
      %52 = vector.load %arg10[%c0_43, %c0_44] : memref<1x128xf32, #tpu.memory_space<vmem>>, vector<1x128xf32>
      tpu.vector_store %arg10[%c0_43, %c0_44], %51 {strides = array<i32>} : memref<1x128xf32, #tpu.memory_space<vmem>>, vector<1x128xf32>,
      %cst_45 = arith.constant 0.000000e+00 : f32
      %53 = vector.broadcast %cst_45 : f32 to vector<1x128xf32>
      %c0_46 = arith.constant 0 : index
      %c0_47 = arith.constant 0 : index
      %54 = vector.load %arg11[%c0_46, %c0_47] : memref<1x128xf32, #tpu.memory_space<vmem>>, vector<1x128xf32>
      tpu.vector_store %arg11[%c0_46, %c0_47], %53 {strides = array<i32>} : memref<1x128xf32, #tpu.memory_space<vmem>>, vector<1x128xf32>,
      %cst_48 = arith.constant 0.000000e+00 : f32
      %55 = vector.broadcast %cst_48 : f32 to vector<2x128xf32>
      %c0_49 = arith.constant 0 : index
      %c0_50 = arith.constant 0 : index
      %56 = vector.load %arg12[%c0_49, %c0_50] : memref<2x128xf32, #tpu.memory_space<vmem>>, vector<2x128xf32>
      tpu.vector_store %arg12[%c0_49, %c0_50], %55 {strides = array<i32>} : memref<2x128xf32, #tpu.memory_space<vmem>>, vector<2x128xf32>,
    } else {
    }
    %c0 = arith.constant 0 : index
    %c0_1 = arith.constant 0 : index
    %c0_2 = arith.constant 0 : index
    %c0_3 = arith.constant 0 : index
    %c0_4 = arith.constant 0 : index
    %3 = vector.load %arg7[%c0, %c0_1, %c0_2, %c0_3, %c0_4] : memref<1x1x1x2x128xbf16, #tpu.memory_space<vmem>>, vector<1x1x1x2x128xbf16>
    %4 = vector.shape_cast %3 : vector<1x1x1x2x128xbf16> to vector<2x128xbf16>
    %c0_5 = arith.constant 0 : index
    %c0_6 = arith.constant 0 : index
    %c0_7 = arith.constant 0 : index
    %c0_8 = arith.constant 0 : index
    %c0_9 = arith.constant 0 : index
    %5 = vector.load %arg4[%c0_5, %c0_6, %c0_7, %c0_8, %c0_9] : memref<1x1x1x2x128xbf16, #tpu.memory_space<vmem>>, vector<1x1x1x2x128xbf16>
    %6 = vector.shape_cast %5 : vector<1x1x1x2x128xbf16> to vector<2x128xbf16>
    %cst = arith.constant dense<0.000000e+00> : vector<128x128xf32>
    %7 = tpu.matmul %4, %6, %cst {dimension_numbers = #tpu.dot_dimension_numbers<[0], [0], [1], [1], [0, 1, 1, 1], [], []>} : vector<2x128xbf16>, vector<2x128xbf16>, vector<128x128xf32> -> vector<128x128xf32>
    %c0_10 = arith.constant 0 : index
    %c0_11 = arith.constant 0 : index
    %c0_12 = arith.constant 0 : index
    %c0_13 = arith.constant 0 : index
    %c0_14 = arith.constant 0 : index
    %8 = vector.load %arg6[%c0_10, %c0_11, %c0_12, %c0_13, %c0_14] : memref<1x1x1x2x128xbf16, #tpu.memory_space<vmem>>, vector<1x1x1x2x128xbf16>
    %9 = vector.shape_cast %8 : vector<1x1x1x2x128xbf16> to vector<2x128xbf16>
    %c0_15 = arith.constant 0 : index
    %c0_16 = arith.constant 0 : index
    %c0_17 = arith.constant 0 : index
    %10 = vector.load %arg5[%c0_15, %c0_16, %c0_17] : memref<1x2x128xbf16, #tpu.memory_space<vmem>>, vector<1x2x128xbf16>
    %11 = vector.shape_cast %10 : vector<1x2x128xbf16> to vector<2x128xbf16>
    %cst_18 = arith.constant dense<0.000000e+00> : vector<128x128xf32>
    %12 = tpu.matmul %9, %11, %cst_18 {dimension_numbers = #tpu.dot_dimension_numbers<[0], [0], [1], [1], [0, 1, 1, 1], [], []>} : vector<2x128xbf16>, vector<2x128xbf16>, vector<128x128xf32> -> vector<128x128xf32>
    %13 = arith.addf %7, %12 : vector<128x128xf32>
    %c128_i32 = arith.constant 128 : i32
    %14 = arith.muli %arg3, %c128_i32 : i32
    %15 = tpu.iota {dimensions = array<i32: 0>} : vector<128x128xi32>
    %16 = vector.broadcast %14 : i32 to vector<128x128xi32>
    %17 = arith.addi %16, %15 : vector<128x128xi32>
    %c64_i32 = arith.constant 64 : i32
    %18 = vector.broadcast %c64_i32 : i32 to vector<128x128xi32>
    %19 = arith.cmpi slt, %17, %18 : vector<128x128xi32>
    %cst_19 = arith.constant -1.000000e+30 : f32
    %20 = vector.broadcast %cst_19 : f32 to vector<128x128xf32>
    %21 = arith.select %19, %13, %20 : vector<128x128xi1>, vector<128x128xf32>
    %c0_20 = arith.constant 0 : index
    %c0_21 = arith.constant 0 : index
    %22 = vector.load %arg10[%c0_20, %c0_21] : memref<1x128xf32, #tpu.memory_space<vmem>>, vector<1x128xf32>
    %cst_22 = arith.constant dense<0xFF800000> : vector<128xf32>
    %23 = vector.multi_reduction <maximumf>, %21, %cst_22 [0] : vector<128x128xf32> to vector<128xf32>
    %24 = vector.shape_cast %23 : vector<128xf32> to vector<1x128xf32>
    %25 = arith.maximumf %22, %24 : vector<1x128xf32>
    %26 = arith.subf %22, %25 : vector<1x128xf32>
    %27 = math.exp %26 : vector<1x128xf32>
    %28 = vector.broadcast %25 : vector<1x128xf32> to vector<128x128xf32>
    %29 = arith.subf %21, %28 : vector<128x128xf32>
    %30 = arith.truncf %29 : vector<128x128xf32> to vector<128x128xbf16>
    %31 = math.exp %30 : vector<128x128xbf16>
    %c0_23 = arith.constant 0 : index
    %c0_24 = arith.constant 0 : index
    %32 = vector.load %arg11[%c0_23, %c0_24] : memref<1x128xf32, #tpu.memory_space<vmem>>, vector<1x128xf32>
    %33 = arith.mulf %27, %32 : vector<1x128xf32>
    %34 = arith.extf %31 : vector<128x128xbf16> to vector<128x128xf32>
    %cst_25 = arith.constant dense<0.000000e+00> : vector<128xf32>
    %35 = vector.multi_reduction <add>, %34, %cst_25 [0] : vector<128x128xf32> to vector<128xf32>
    %36 = vector.shape_cast %35 : vector<128xf32> to vector<1x128xf32>
    %37 = arith.addf %33, %36 : vector<1x128xf32>
    %c0_26 = arith.constant 0 : index
    %c0_27 = arith.constant 0 : index
    %38 = vector.load %arg11[%c0_26, %c0_27] : memref<1x128xf32, #tpu.memory_space<vmem>>, vector<1x128xf32>
    tpu.vector_store %arg11[%c0_26, %c0_27], %37 {strides = array<i32>} : memref<1x128xf32, #tpu.memory_space<vmem>>, vector<1x128xf32>,
    %c0_28 = arith.constant 0 : index
    %c0_29 = arith.constant 0 : index
    %39 = vector.load %arg12[%c0_28, %c0_29] : memref<2x128xf32, #tpu.memory_space<vmem>>, vector<2x128xf32>
    %40 = vector.broadcast %27 : vector<1x128xf32> to vector<2x128xf32>
    %41 = arith.mulf %40, %39 : vector<2x128xf32>
    %c0_30 = arith.constant 0 : index
    %c0_31 = arith.constant 0 : index
    %c0_32 = arith.constant 0 : index
    %c0_33 = arith.constant 0 : index
    %c0_34 = arith.constant 0 : index
    %42 = vector.load %arg8[%c0_30, %c0_31, %c0_32, %c0_33, %c0_34] : memref<1x1x1x2x128xbf16, #tpu.memory_space<vmem>>, vector<1x1x1x2x128xbf16>
    %43 = vector.shape_cast %42 : vector<1x1x1x2x128xbf16> to vector<2x128xbf16>
    %cst_35 = arith.constant dense<0.000000e+00> : vector<2x128xf32>
    %44 = tpu.matmul %43, %31, %cst_35 {dimension_numbers = #tpu.dot_dimension_numbers<[1], [0], [0], [1], [0, 0, 1, 1], [], []>} : vector<2x128xbf16>, vector<128x128xbf16>, vector<2x128xf32> -> vector<2x128xf32>
    %45 = arith.addf %41, %44 : vector<2x128xf32>
    %c0_36 = arith.constant 0 : index
    %c0_37 = arith.constant 0 : index
    %46 = vector.load %arg12[%c0_36, %c0_37] : memref<2x128xf32, #tpu.memory_space<vmem>>, vector<2x128xf32>
    tpu.vector_store %arg12[%c0_36, %c0_37], %45 {strides = array<i32>} : memref<2x128xf32, #tpu.memory_space<vmem>>, vector<2x128xf32>,
    %c0_38 = arith.constant 0 : index
    %c0_39 = arith.constant 0 : index
    %47 = vector.load %arg10[%c0_38, %c0_39] : memref<1x128xf32, #tpu.memory_space<vmem>>, vector<1x128xf32>
    tpu.vector_store %arg10[%c0_38, %c0_39], %25 {strides = array<i32>} : memref<1x128xf32, #tpu.memory_space<vmem>>, vector<1x128xf32>,
    %c0_i32_40 = arith.constant 0 : i32
    %48 = arith.cmpi eq, %arg3, %c0_i32_40 : i32
    %49 = arith.extui %48 : i1 to i32
    %c0_i32_41 = arith.constant 0 : i32
    %50 = arith.cmpi ne, %49, %c0_i32_41 : i32
    scf.if %50 {
      %c0_42 = arith.constant 0 : index
      %c0_43 = arith.constant 0 : index
      %51 = vector.load %arg12[%c0_42, %c0_43] : memref<2x128xf32, #tpu.memory_space<vmem>>, vector<2x128xf32>
      %c0_44 = arith.constant 0 : index
      %c0_45 = arith.constant 0 : index
      %52 = vector.load %arg11[%c0_44, %c0_45] : memref<1x128xf32, #tpu.memory_space<vmem>>, vector<1x128xf32>
      %53 = tpu.reciprocal %52 {approx = true} : vector<1x128xf32> -> vector<1x128xf32>
      %54 = vector.broadcast %53 : vector<1x128xf32> to vector<2x128xf32>
      %55 = arith.mulf %51, %54 : vector<2x128xf32>
      %c0_46 = arith.constant 0 : index
      %c0_47 = arith.constant 0 : index
      %c0_48 = arith.constant 0 : index
      %c0_49 = arith.constant 0 : index
      %56 = vector.load %arg9[%c0_46, %c0_47, %c0_48, %c0_49] : memref<1x1x2x128xf32, #tpu.memory_space<vmem>>, vector<1x1x2x128xf32>
      %57 = vector.shape_cast %56 : vector<1x1x2x128xf32> to vector<2x128xf32>
      %58 = vector.shape_cast %55 : vector<2x128xf32> to vector<1x1x2x128xf32>
      tpu.vector_store %arg9[%c0_46, %c0_47, %c0_48, %c0_49], %58 {strides = array<i32>} : memref<1x1x2x128xf32, #tpu.memory_space<vmem>>, vector<1x1x2x128xf32>,
    } else {
    }
    return
  }
  func.func @transform_0(%arg0: i32, %arg1: i32, %arg2: i32, %arg3: i32) -> (i32, i32, i32, i32, i32) {
    %c0_i32 = arith.constant 0 : i32
    %c0_i32_0 = arith.constant 0 : i32
    %c0_i32_1 = arith.constant 0 : i32
    return %arg0, %c0_i32, %arg1, %c0_i32_0, %arg2 : i32, i32, i32, i32, i32
  }
  func.func @transform_1(%arg0: i32, %arg1: i32, %arg2: i32, %arg3: i32) -> (i32, i32, i32) {
    %c0_i32 = arith.constant 0 : i32
    %c0_i32_0 = arith.constant 0 : i32
    return %arg1, %c0_i32, %arg2 : i32, i32, i32
  }
  func.func @transform_2(%arg0: i32, %arg1: i32, %arg2: i32, %arg3: i32) -> (i32, i32, i32, i32, i32) {
    %c0_i32 = arith.constant 0 : i32
    %c0_i32_0 = arith.constant 0 : i32
    %c0_i32_1 = arith.constant 0 : i32
    return %arg0, %c0_i32, %arg1, %c0_i32_0, %arg3 : i32, i32, i32, i32, i32
  }
  func.func @transform_3(%arg0: i32, %arg1: i32, %arg2: i32, %arg3: i32) -> (i32, i32, i32, i32, i32) {
    %c1_i32 = arith.constant 1 : i32
    %c0_i32 = arith.constant 0 : i32
    %c0_i32_0 = arith.constant 0 : i32
    return %arg0, %c1_i32, %arg1, %c0_i32, %arg3 : i32, i32, i32, i32, i32
  }
  func.func @transform_4(%arg0: i32, %arg1: i32, %arg2: i32, %arg3: i32) -> (i32, i32, i32, i32, i32) {
    %c2_i32 = arith.constant 2 : i32
    %c0_i32 = arith.constant 0 : i32
    %c0_i32_0 = arith.constant 0 : i32
    return %arg0, %c2_i32, %arg1, %c0_i32, %arg3 : i32, i32, i32, i32, i32
  }
  func.func @transform_5(%arg0: i32, %arg1: i32, %arg2: i32, %arg3: i32) -> (i32, i32, i32, i32) {
    %c0_i32 = arith.constant 0 : i32
    %c0_i32_0 = arith.constant 0 : i32
    return %arg0, %arg1, %c0_i32, %arg2 : i32, i32, i32, i32
  }
}

</mosaic_0001>

<bundles_post_ra>
// kernel: tra_attention.2
= control target key start
LH: loop header
LB: loop body
LE: loop exit
PB: predicated region body
PF: predicated region fallthrough
CT: control target
= control target key end

     0   :  { %s494_s12 = smov 0   ;;  %s496_s13 = smov 0   ;;  %s544_s0 = inlined_call_operand.vmem [shape: bf16[2,8,128], index: 0, kind: input, shape index: {}]   ;;  %s545_s1 = inlined_call_operand.vmem [shape: bf16[24,8], index: 1, kind: input, shape index: {}]   ;;  %s546_s2 = inlined_call_operand.vmem [shape: f32[24,1], index: 2, kind: input, shape index: {}]   ;;  %s547_s3 = inlined_call_operand.vmem [shape: bf16[2,24,128], index: 3, kind: output, shape index: {}]  }
   0x1   :  { %s498_s14 = smov 0  }
   0x2 LB: > { %s25_s15 = sadd.s32 1, %s467_s13  ;;  %p389_p0 = scmp.ge.s32.totalorder %s471_s14, 1  ;;  %s471_s14 = sphi %s498_s14, %s13_s14   ;;  %s467_s13 = sphi %s496_s13, %s549_s13   ;;  %s463_s12 = sphi %s494_s12, %s548_s12  }
   0x3   : > { %p27_p1 = scmp.ge.s32.totalorder %s25_s15, 2  ;;  %p155_p2 = scmp.lt.s32.totalorder %s471_s14, 3 }
   0x5   : > { %s551_s15 = smov (%p27_p1, %s25_s15), 0  ;;  %p156_p3 = pnand %p389_p0, %p155_p2 }
   0x6   : > { %p184_p4 = scmp.lt.s32.totalorder (!%p156_p3), %s463_s12, 1 }
   0x7   : > { %159 = sbr.rel (%p156_p3) target bundleno = 224 (0xe0), region = 32 }
   0xc   : > { %v447_v0 = vld [vmem:[%s545_s1] sm:$0xff]   ;;  %vm230_vm0 = vcmask 64512   ;;  %s553_s12 = smov (!%p184_p4, %s463_s12), 1  ;;  %v206_v2 = vld [vmem:[%s546_s2 + $0x10] sm:$0xff]  ;;  %v473_v3 = vmov 0   ;;  %vm237_vm1 = vcmask 1043456  }
   0xd   : > { %v204_v1 = vld [vmem:[%s546_s2] sm:$0xff]  ;;  %414 = vmatprep.mubr.msk.bf16.mxu0 %vm230_vm0, %v447_v0  ;;  %445 = vset.pattern.permute.xlu0 %v473_v3  ;;  %s390_s22 = sshll.u32 %s553_s12, 2  ;;  %v205_v4 = vld [vmem:[%s546_s2 + $0x8] sm:$0xff]  ;;  %s419_s30 = smul.u32 12, %s553_s12 }
   0xe   : > { %209 = vperm.xlu0 %445, %v204_v1   ;;  %446 = vset.pattern.permute.xlu1 %v473_v3  ;;  %s190_s25 = scalar_lea.vmem %s544_s0, %s390_s22  ;;  %v448_v7 = vld [vmem:[%s545_s1 + $0x8] ss:$0 sps:$4 sm:$0xff]  }
   0xf   : > { %219 = vperm.xlu1 %446, %v206_v2   ;;  %v203_v5 = vld [vmem:[%s190_s25] sm:$0xf]  ;;  %s198_s6 = scalar_lea.vmem %s547_s3, %s419_s30 }
  0x10   : > { %418 = vmatprep.subr.msk.bf16.mxu0 %vm237_vm1, %v203_v5  ;;  %v239_v6 = vsel %vm237_vm1, %v203_v5, 0 }
  0x11   : > { %413 = vmatpush3.bf16.msra.mxu0 %v239_v6 }
  0x12   : > { %214 = vperm.xlu0 %445, %v205_v4  }
  0x14   : > { %415 = vmatmul.mubr.msk.bf16.vlgmr.msra.gmra.mxu0 %vm230_vm0, %v448_v7 }
  0x89   : > { %v210_v9 = vpop.permute.xlu0 %209 }
  0x8a   : > { %v220_v8 = vpop.permute.xlu1 %219 }
  0x8d   : > { %v215_v15 = vpop.permute.xlu0 %214 }
  0xd4   : > { %v416_v10 = vpop.f32.mrf.mxu0 }
  0xd5   : > { %v284_v11 = vadd.f32 %v416_v10, %v220_v8 }
  0xd6   : > { %v275_v12 = vpop.f32.mrf.mxu0 }
  0xd7   : > { %v403_v13 = vpack.c.bf16 %v284_v11, %v284_v11  ;;  %v276_v17 = vadd.f32 %v275_v12, %v210_v9 }
  0xd8   : > { %v417_v14 = vpop.f32.mrf.mxu0 }
  0xd9   : > { %304 = vst [vmem:[%s198_s6 + $0x8] sm:$0xf] %v403_v13 }
  0xda   : > { %v278_v16 = vpop.f32.mrf.mxu0 }
  0xdb   : > { %v279_v18 = vadd.f32 %v278_v16, %v215_v15 }
  0xdd   : > { %v407_v19 = vpack.c.bf16 %v279_v18, %v276_v17 }
  0xdf   : > { %408 = vst [vmem:[%s198_s6] sm:$0xff] %v407_v19  }
  0xe0 PF: > { %s13_s14 = sadd.s32 1, %s471_s14   ;;  %s548_s12 = smov %s467_s13 }
  0xe1   : > { %p10_p5 = scmp.ge.s32.totalorder %s13_s14, 4   ;;  %s549_s13 = smov %s551_s15 }
  0xe3   :  { %12 = sbr.rel (!%p10_p5) target bundleno = 2 (0x2), region = 62 }

// kernel: tra_attention.3
= control target key start
LH: loop header
LB: loop body
LE: loop exit
PB: predicated region body
PF: predicated region fallthrough
CT: control target
= control target key end

     0   :  { %s1400_s18 = smov 0   ;;  %s1402_s19 = smov 0   ;;  %s1513_s0 = inlined_call_operand.vmem [shape: bf16[2,3,4,2,128], index: 0, kind: input, shape index: {}, may-alias: {0,2,3,4}]   ;;  %s1514_s1 = inlined_call_operand.vmem [shape: bf16[4,2,128], index: 1, kind: input, shape index: {}]   ;;  %s1515_s2 = inlined_call_operand.vmem [shape: bf16[2,3,4,2,128], index: 2, kind: input, shape index: {}, may-alias: {0,2,3,4}]   ;;  %s1516_s3 = inlined_call_operand.vmem [shape: bf16[2,3,4,2,128], index: 3, kind: input, shape index: {}, may-alias: {0,2,3,4}]   ;;  %s1517_s4 = inlined_call_operand.vmem [shape: bf16[2,3,4,2,128], index: 4, kind: input, shape index: {}, may-alias: {0,2,3,4}]   ;;  %s1518_s5 = inlined_call_operand.vmem [shape: f32[2,4,2,128], index: 5, kind: output, shape index: {}]  }
   0x1   :  { %s1404_s20 = smov 0   ;;  %s1406_s21 = smov 0  }
   0x2   :  { %s1408_s22 = smov 0  }
   0x3 LB: > { %s37_s23 = sadd.s32 1, %s1357_s20  ;;  %s41_s24 = sadd.s32 1, %s1361_s21  ;;  %s1365_s22 = sphi %s1408_s22, %s15_s22   ;;  %s1361_s21 = sphi %s1406_s21, %s1522_s21   ;;  %s1357_s20 = sphi %s1404_s20, %s1521_s20   ;;  %s1353_s19 = sphi %s1402_s19, %s1520_s19   ;;  %s1349_s18 = sphi %s1400_s18, %s1519_s18  }
   0x4   : > { %p39_p0 = scmp.ge.s32.totalorder %s37_s23, 4  ;;  %p1160_p1 = scmp.ge.s32.totalorder %s1365_s22, 1 }
   0x5   : > { %p298_p2 = scmp.lt.s32.totalorder %s1365_s22, 9 }
   0x6   : > { %s1524_s23 = smov (%p39_p0, %s37_s23), 0  ;;  %s1526_s24 = smov (!%p39_p0, %s41_s24), %s1361_s21 }
   0x7   : > { %p299_p3 = pnand %p1160_p1, %p298_p2  ;;  %p43_p4 = scmp.ge.s32.totalorder %s1526_s24, 2 }
   0x8   : > { %p375_p5 = scmp.lt.s32.totalorder (!%p299_p3), %s1353_s19, 1  ;;  %p377_p6 = scmp.lt.s32.totalorder (!%p299_p3), %s1349_s18, 3 }
   0x9   : > { %s1528_s24 = smov (%p43_p4, %s1526_s24), 0  ;;  %302 = sbr.rel (%p299_p3) target bundleno = 651 (0x28b), region = 40 }
   0xe   : > { %s1530_s19 = smov (!%p375_p5, %s1353_s19), 1  ;;  %s1532_s18 = smov (!%p377_p6, %s1349_s18), 3  ;;  %vm487_vm0 = vcmask 1040384   ;;  %vm462_vm1 = vcmask 15360   ;;  %v1367_v18 = vmov -inf   ;;  %v1368_v19 = vmov 0.0  }
   0xf   : > { %s1268_s25 = smul.u32 12, %s1530_s19  ;;  %s1161_s26 = sshll.u32 %s1530_s19, 2  ;;  %439 = vst [vmem:[#allocation2] sm:$0x1] %v1367_v18  ;;  %440 = vst [vmem:[#allocation3] sm:$0x1] %v1368_v19 }
  0x10   : > { %s1430_s27 = sadd.s32 %s1161_s26, %s1532_s18  ;;  %s390_s30 = scalar_lea.vmem %s1514_s1, %s1532_s18  ;;  %441 = vst [vmem:[#allocation4] sm:$0x3] %v1368_v19  ;;  %vm1369_vm2 = vmmov 0  }
  0x11   : > { %s1435_s6 = sadd.s32 %s1268_s25, %s1532_s18  ;;  %v445_v0 = vld [vmem:[%s390_s30] sm:$0x1]  ;;  %s1162_s19 = sshll.u32 %s1430_s27, 1 }
  0x12   : > { %s400_s9 = scalar_lea.vmem %s1515_s2, %s1435_s6  ;;  %1266 = vmatprep.subr.msk.bf16.mxu0 %vm487_vm0, %v445_v0  ;;  %v489_v1 = vsel %vm487_vm0, %v445_v0, 0  ;;  %s384_s12 = scalar_lea.vmem %s1513_s0, %s1435_s6 }
  0x13   : > { %v444_v2 = vld [vmem:[%s400_s9] sm:$0x1]  ;;  %1211 = vmatpush3.bf16.msra.mxu0 %v489_v1  ;;  %s1073_s15 = scalar_lea.vmem %s1516_s3, %s1435_s6  ;;  %s1078_s18 = scalar_lea.vmem %s1517_s4, %s1435_s6 }
  0x14   : > { %446 = vxpose.xlu0.c.b16.start.end [1/1] (short) %v444_v2, 128  ;;  %v443_v3 = vld [vmem:[%s384_s12] sm:$0x1]  ;;  %v1163_v5 = vld [vmem:[%s1073_s15 + $0x4] sm:$0x1]  ;;  %1246 = vmatprep.subr.bf16.mxu0 %v1368_v19  ;;  %s433_s28 = scalar_lea.vmem %s1518_s5, %s1162_s19 }
  0x15   : > { %1267 = vmatprep.subr.msk.bf16.mxu1 %vm487_vm0, %v443_v3  ;;  %v629_v4 = vsel %vm487_vm0, %v443_v3, 0 }
  0x16   : > { %1229 = vmatpush3.bf16.msra.mxu1 %v629_v4 }
  0x31   : > { %588 = vxpose.xlu0.c.b16.start.end [1/1] (short) %v1163_v5, 128 }
  0x76   : > { %v454_v6 = vpop.trf.xlu0 }
  0x77   : > { %1212 = vmatprep.mubr.msk.bf16.mxu0 %vm462_vm1, %v454_v6 }
  0x7a   : > { %v455_v7 = vpop.trf.xlu0 }
  0x7b   : > { %1213 = vmatmul.mubr.msk.bf16.vlgmr.msra.gmra.mxu0 %vm462_vm1, %v455_v7 }
  0x7e   : > { %v456_v8 = vpop.trf.xlu0 }
  0x7f   : > { %1216 = vmatprep.mubr.msk.bf16.mxu0 %vm462_vm1, %v456_v8 }
  0x82   : > { %v457_v9 = vpop.trf.xlu0 }
  0x83   : > { %1217 = vmatmul.mubr.msk.bf16.gmra.mxu0 %vm462_vm1, %v457_v9  ;;  %v822_v9 = vlaneseq }
  0x86   : > { %v458_v10 = vpop.trf.xlu0 }
  0x87   : > { %1220 = vmatprep.mubr.msk.bf16.mxu0 %vm462_vm1, %v458_v10 }
  0x8a   : > { %v459_v11 = vpop.trf.xlu0 }
  0x8b   : > { %1221 = vmatmul.mubr.msk.bf16.gmra.mxu0 %vm462_vm1, %v459_v11 }
  0x8e   : > { %v460_v12 = vpop.trf.xlu0 }
  0x8f   : > { %1224 = vmatprep.mubr.msk.bf16.mxu0 %vm462_vm1, %v460_v12  ;;  %v823_v12 = vshrl.u32 %v822_v9, 7 }
  0x92   : > { %v461_v13 = vpop.trf.xlu0 }
  0x93   : > { %1225 = vmatmul.mubr.msk.bf16.gmra.mxu0 %vm462_vm1, %v461_v13 }
  0x94   : > { %1262 = vmatprep.mubr.msk.bf16.mxu0 %vm1369_vm2, %v1368_v19 }
  0x96   : > { %v596_v14 = vpop.trf.xlu0 }
  0x97   : > { %1230 = vmatprep.mubr.msk.bf16.mxu1 %vm462_vm1, %v596_v14  ;;  %v1469_v14 = vld [vmem:[#allocation2] sm:$0x1] }
  0x9a   : > { %v597_v15 = vpop.trf.xlu0 }
  0x9b   : > { %1231 = vmatmul.mubr.msk.bf16.vlgmr.msra.gmra.mxu1 %vm462_vm1, %v597_v15 }
  0x9e   : > { %v598_v16 = vpop.trf.xlu0 }
  0x9f   : > { %1234 = vmatprep.mubr.msk.bf16.mxu1 %vm462_vm1, %v598_v16  ;;  %v1471_v16 = vsub.s32 0, %v823_v12 }
  0xa2   : > { %v599_v17 = vpop.trf.xlu0 }
  0xa3   : > { %1235 = vmatmul.mubr.msk.bf16.gmra.mxu1 %vm462_vm1, %v599_v17 }
  0xa6   : > { %v600_v20 = vpop.trf.xlu0 }
  0xa7   : > { %1238 = vmatprep.mubr.msk.bf16.mxu1 %vm462_vm1, %v600_v20 }
  0xaa   : > { %v601_v21 = vpop.trf.xlu0 }
  0xab   : > { %1239 = vmatmul.mubr.msk.bf16.gmra.mxu1 %vm462_vm1, %v601_v21 }
  0xae   : > { %v602_v22 = vpop.trf.xlu0 }
  0xaf   : > { %1242 = vmatprep.mubr.msk.bf16.mxu1 %vm462_vm1, %v602_v22 }
  0xb2   : > { %v603_v25 = vpop.trf.xlu0 }
  0xb3   : > { %1243 = vmatmul.mubr.msk.bf16.gmra.mxu1 %vm462_vm1, %v603_v25 }
 0x13b   : > { %v1214_v23 = vpop.f32.mrf.mxu0 }
 0x13d   : > { %v525_v24 = vpop.f32.mrf.mxu0 }
 0x13f   : > { %v1215_v26 = vpop.f32.mrf.mxu0 }
 0x141   : > { %v528_v27 = vpop.f32.mrf.mxu0 }
 0x143   : > { %v1218_v28 = vpop.f32.mrf.mxu0 }
 0x145   : > { %v541_v29 = vpop.f32.mrf.mxu0 }
 0x147   : > { %v1219_v30 = vpop.f32.mrf.mxu0 }
 0x149   : > { %v544_v31 = vpop.f32.mrf.mxu0 }
 0x14b   : > { %v1222_v32 = vpop.f32.mrf.mxu0 }
 0x14d   : > { %v557_v33 = vpop.f32.mrf.mxu0 }
 0x14f   : > { %v1223_v34 = vpop.f32.mrf.mxu0 }
 0x151   : > { %v560_v35 = vpop.f32.mrf.mxu0 }
 0x153   : > { %v1226_v36 = vpop.f32.mrf.mxu0 }
 0x155   : > { %v573_v37 = vpop.f32.mrf.mxu0 }
 0x157   : > { %v1227_v38 = vpop.f32.mrf.mxu0 }
 0x159   : > { %v576_v39 = vpop.f32.mrf.mxu0 }
 0x15b   : > { %v1232_v40 = vpop.f32.mrf.mxu1 }
 0x15c   : > { %v674_v47 = vadd.f32 %v1232_v40, %v1214_v23 }
 0x15d   : > { %v665_v41 = vpop.f32.mrf.mxu1 }
 0x15e   : > { %v666_v48 = vadd.f32 %v665_v41, %v525_v24 }
 0x15f   : > { %v1233_v42 = vpop.f32.mrf.mxu1 }
 0x160   : > { %v677_v51 = vadd.f32 %v1233_v42, %v1215_v26 }
 0x161   : > { %v668_v43 = vpop.f32.mrf.mxu1 }
 0x162   : > { %v669_v56 = vadd.f32 %v668_v43, %v528_v27 }
 0x163   : > { %v1236_v44 = vpop.f32.mrf.mxu1 }
 0x164   : > { %v690_v45 = vadd.f32 %v1236_v44, %v1218_v28 }
 0x165   : > { %v681_v46 = vpop.f32.mrf.mxu1 }
 0x166   : > { %v682_v49 = vadd.f32 %v681_v46, %v541_v29  ;;  %v798_v52 = vmax.f32 %v674_v47, %v690_v45 }
 0x167   : > { %v1237_v50 = vpop.f32.mrf.mxu1 }
 0x168   : > { %v796_v53 = vmax.f32 %v666_v48, %v682_v49  ;;  %v693_v54 = vadd.f32 %v1237_v50, %v1219_v30  ;;  %v802_v59 = vmax.f32 %v798_v52, -1e+30 }
 0x169   : > { %v684_v55 = vpop.f32.mrf.mxu1 }
 0x16a   : > { %v799_v57 = vmax.f32 %v677_v51, %v693_v54  ;;  %v685_v58 = vadd.f32 %v684_v55, %v544_v31  ;;  %v800_v60 = vmax.f32 %v796_v53, -1e+30  ;;  %v806_v1 = vmax.f32 %v802_v59, -1e+30 }
 0x16c   : > { %v803_v61 = vmax.f32 %v799_v57, -1e+30  ;;  %v797_v62 = vmax.f32 %v669_v56, %v685_v58  ;;  %v804_v2 = vmax.f32 %v800_v60, -1e+30 }
 0x16e   : > { %v807_v63 = vmax.f32 %v803_v61, -1e+30  ;;  %v801_v0 = vmax.f32 %v797_v62, -1e+30 }
 0x170   : > { %v805_v3 = vmax.f32 %v801_v0, -1e+30  ;;  %v809_v4 = vmax.f32 %v806_v1, %v807_v63 }
 0x172   : > { %v808_v5 = vmax.f32 %v804_v2, %v805_v3 }
 0x174   : > { %v810_v6 = vmax.f32 %v808_v5, %v809_v4 }
 0x176   : > { %v811_v7 = vrot.slane %v810_v6, 4 }
 0x178   : > { %v812_v8 = vmax.f32 %v810_v6, %v811_v7  ;;  %v1180_v7 = vld [vmem:[%s1078_s18 + $0x8] sm:$0x1] }
 0x17a   : > { %v813_v10 = vrot.slane %v812_v8, 2 }
 0x17c   : > { %v814_v11 = vmax.f32 %v812_v8, %v813_v10 }
 0x17e   : > { %v815_v13 = vrot.slane %v814_v11, 1 }
 0x180   : > { %v816_v15 = vmax.f32 %v814_v11, %v815_v13  ;;  %v875_v13 = vld [vmem:[#allocation3] sm:$0x1] }
 0x182   : > { %v1474_v17 = vmax.f32 %v1469_v14, %v816_v15 }
 0x184   : > { %v825_v18 = vrot.slane %v1474_v17, %v1471_v16  ;;  %967 = vst [vmem:[#allocation2] sm:$0x1] %v1474_v17  ;;  %v818_v63 = vsub.f32 %v1469_v14, %v1474_v17 }
 0x186   : > { %v827_v20 = vsub.f32 %v666_v48, %v825_v18  ;;  %v828_v21 = vsub.f32 %v669_v56, %v825_v18  ;;  %v829_v22 = vsub.f32 %v674_v47, %v825_v18  ;;  %v830_v23 = vsub.f32 %v677_v51, %v825_v18 }
 0x187   : > { %v831_v24 = vsub.f32 %v682_v49, %v825_v18  ;;  %v832_v25 = vsub.f32 %v685_v58, %v825_v18  ;;  %v833_v26 = vsub.f32 %v690_v45, %v825_v18  ;;  %v834_v27 = vsub.f32 %v693_v54, %v825_v18 }
 0x188   : > { %v835_v28 = vsub.f32 -1e+30, %v825_v18  ;;  %v843_v29 = vpack.c.bf16 %v828_v21, %v827_v20  ;;  %v844_v30 = vpack.c.bf16 %v830_v23, %v829_v22  ;;  %v819_v1 = vmul.f32 1.442695, %v818_v63 }
 0x189   : > { %v845_v31 = vpack.c.bf16 %v832_v25, %v831_v24  ;;  %v846_v36 = vpack.c.bf16 %v834_v27, %v833_v26 }
 0x18a   : > { %v847_v32 = vpack.c.bf16 %v835_v28, %v835_v28  ;;  %v852_v33 = vmul.bf16 1069105081, %v843_v29  ;;  %v855_v34 = vmul.bf16 1069105081, %v844_v30  ;;  %v916_v29 = vld [vmem:[#allocation4] sm:$0x3] }
 0x18b   : > { %v858_v35 = vmul.bf16 1069105081, %v845_v31  ;;  %v861_v38 = vmul.bf16 1069105081, %v846_v36 }
 0x18c   : > { %1313 = vpow.bf16 %v852_v33  ;;  %v864_v37 = vmul.bf16 1069105081, %v847_v32 }
 0x18d   : > { %1315 = vpow.bf16 %v855_v34 }
 0x18e   : > { %1317 = vpow.bf16 %v858_v35 }
 0x18f   : > { %1319 = vpow.bf16 %v864_v37 }
 0x190   : > { %1321 = vpow.bf16 %v861_v38 }
 0x191   : > { %1323 = vpow2.f32 %v819_v1 }
 0x19a   : > { %v1314_v39 = vpop.eup %1313 }
 0x19b   : > { %v1316_v40 = vpop.eup %1315  ;;  %v877_v41 = vunpack.c.l.bf16 %v1314_v39  ;;  %v878_v42 = vunpack.c.h.bf16 %v1314_v39 }
 0x19c   : > { %v1318_v43 = vpop.eup %1317  ;;  %v879_v44 = vunpack.c.l.bf16 %v1316_v40  ;;  %v880_v47 = vunpack.c.h.bf16 %v1316_v40 }
 0x19d   : > { %v893_v45 = vadd.f32 %v878_v42, %v877_v41  ;;  %v1320_v46 = vpop.eup %1319  ;;  %v881_v49 = vunpack.c.l.bf16 %v1318_v43  ;;  %v882_v52 = vunpack.c.h.bf16 %v1318_v43 }
 0x19e   : > { %1247 = vmatpush3.bf16.msra.mxu0 %v1320_v46  ;;  %v1322_v51 = vpop.eup %1321  ;;  %v885_v58 = vunpack.c.l.bf16 %v1320_v46  ;;  %v886_v60 = vunpack.c.h.bf16 %v1320_v46 }
 0x19f   : > { %v894_v48 = vadd.f32 %v893_v45, %v879_v44  ;;  %1248 = vmatprep.subr.bf16.mxu0 %v1368_v19  ;;  %v883_v54 = vunpack.c.l.bf16 %v1322_v51  ;;  %v884_v56 = vunpack.c.h.bf16 %v1322_v51  ;;  %v1324_v12 = vpop.eup %1323 }
 0x1a0   : > { %v876_v15 = vmul.f32 %v1324_v12, %v875_v13  ;;  %v921_v28 = vrot.slane %v1324_v12, %v1471_v16 }
 0x1a1   : > { %v895_v50 = vadd.f32 %v894_v48, %v880_v47 }
 0x1a2   : > { %1249 = vmatpush3.bf16.msra.mxu0 %v1320_v46  ;;  %v923_v30 = vmul.f32 %v921_v28, %v916_v29 }
 0x1a3   : > { %v896_v53 = vadd.f32 %v895_v50, %v881_v49  ;;  %1250 = vmatprep.subr.bf16.mxu0 %v1368_v19 }
 0x1a5   : > { %v897_v55 = vadd.f32 %v896_v53, %v882_v52 }
 0x1a6   : > { %1251 = vmatpush3.bf16.msra.mxu0 %v1320_v46 }
 0x1a7   : > { %v898_v57 = vadd.f32 %v897_v55, %v883_v54  ;;  %1252 = vmatprep.subr.bf16.mxu0 %v1368_v19 }
 0x1a9   : > { %v899_v59 = vadd.f32 %v898_v57, %v884_v56 }
 0x1aa   : > { %1253 = vmatpush3.bf16.msra.mxu0 %v1320_v46 }
 0x1ab   : > { %v900_v61 = vadd.f32 %v899_v59, %v885_v58  ;;  %1254 = vmatprep.subr.bf16.mxu0 %v1368_v19 }
 0x1ad   : > { %v901_v62 = vadd.f32 %v900_v61, %v886_v60 }
 0x1ae   : > { %1255 = vmatpush3.bf16.msra.mxu0 %v1322_v51 }
 0x1af   : > { %v902_v0 = vadd.f32 %v901_v62, %v885_v58  ;;  %1256 = vmatprep.subr.bf16.mxu0 %v1368_v19 }
 0x1b1   : > { %v903_v2 = vadd.f32 %v902_v0, %v886_v60 }
 0x1b2   : > { %1257 = vmatpush3.bf16.msra.mxu0 %v1318_v43 }
 0x1b3   : > { %v904_v3 = vadd.f32 %v903_v2, %v885_v58  ;;  %1258 = vmatprep.subr.bf16.mxu0 %v1368_v19 }
 0x1b5   : > { %v905_v4 = vadd.f32 %v904_v3, %v886_v60 }
 0x1b6   : > { %1259 = vmatpush3.bf16.msra.mxu0 %v1316_v40 }
 0x1b7   : > { %v906_v5 = vadd.f32 %v905_v4, %v885_v58  ;;  %1260 = vmatprep.subr.bf16.mxu0 %v1368_v19  ;;  %v1240_v19 = vpop.f32.mrf.mxu1 }
 0x1b9   : > { %v907_v6 = vadd.f32 %v906_v5, %v886_v60  ;;  %v697_v20 = vpop.f32.mrf.mxu1 }
 0x1ba   : > { %1261 = vmatpush3.bf16.msra.mxu0 %v1314_v39 }
 0x1bb   : > { %v908_v8 = vrot.slane %v907_v6, 4  ;;  %v1241_v21 = vpop.f32.mrf.mxu1 }
 0x1bd   : > { %v909_v9 = vadd.f32 %v908_v8, %v907_v6  ;;  %1263 = vmatmul.mubr.bf16.vlgmr.msra.gmra.mxu0 %v1180_v7  ;;  %v700_v22 = vpop.f32.mrf.mxu1 }
 0x1bf   : > { %v910_v10 = vrot.slane %v909_v9, 2  ;;  %v1244_v23 = vpop.f32.mrf.mxu1 }
 0x1c1   : > { %v911_v11 = vadd.f32 %v910_v10, %v909_v9  ;;  %v713_v24 = vpop.f32.mrf.mxu1 }
 0x1c3   : > { %v912_v14 = vrot.slane %v911_v11, 1  ;;  %v1245_v25 = vpop.f32.mrf.mxu1 }
 0x1c5   : > { %v913_v17 = vadd.f32 %v912_v14, %v911_v11  ;;  %v716_v26 = vpop.f32.mrf.mxu1 }
 0x1c7   : > { %v914_v18 = vadd.f32 %v913_v17, %v876_v15 }
 0x1c9   : > { %915 = vst [vmem:[#allocation3] sm:$0x1] %v914_v18 }
 0x1d0   : > { %v972_v27 = vld [vmem:[#allocation3] sm:$0x1] }
 0x1d1   : > { %1325 = vrcp.f32 %v972_v27 }
 0x1de   : > { %v1326_v35 = vpop.eup %1325 }
 0x1df   : > { %v978_v37 = vrot.slane %v1326_v35, %v1471_v16 }
 0x27d   : > { %v959_v31 = vpop.f32.mrf.mxu0 }
 0x27e   : > { %v965_v32 = vadd.f32 %v959_v31, %v923_v30 }
 0x27f   : > { %v1264_v33 = vpop.f32.mrf.mxu0 }
 0x280   : > { %966 = vst [vmem:[#allocation4] sm:$0x3] %v965_v32 }
 0x281   : > { %v962_v34 = vpop.f32.mrf.mxu0 }
 0x283   : > { %v1265_v36 = vpop.f32.mrf.mxu0 }
 0x287   : > { %v971_v38 = vld [vmem:[#allocation4] sm:$0x3] }
 0x288   : > { %v980_v39 = vmul.f32 %v978_v37, %v971_v38 }
 0x28a   : > { %981 = vst [vmem:[%s433_s28] sm:$0x3] %v980_v39 }
 0x28b PF: > { %s15_s22 = sadd.s32 1, %s1365_s22   ;;  %s1519_s18 = smov %s1357_s20 }
 0x28c   : > { %p12_p7 = scmp.ge.s32.totalorder %s15_s22, 10   ;;  %s1520_s19 = smov %s1361_s21 }
 0x28d   : > { %s1521_s20 = smov %s1524_s23  ;;  %s1522_s21 = smov %s1528_s24 }
 0x28e   :  { %14 = sbr.rel (!%p12_p7) target bundleno = 3 (0x3), region = 90 }

</bundles_post_ra>
